<compile_context>
chip_gen: v6e
topology: v6e:2x2x1
jax: 0.10.0
libtpu: 0.0.40
codegen_flags: <defaults>
</compile_context>

<pallas_src>
from functools import partial

import jax
import jax.numpy as jnp
from jax import lax
from jax.experimental import pallas as pl
from jax.experimental.pallas import tpu as pltpu

_CLAMP_LO = 1e-12
_CLAMP_HI = 1e12
_LANE = 128
_SUBLANE = 8


def _round_up(n, m):
    return ((n + m - 1) // m) * m


def _inlier_tile(labels_ref, xt_ref, ct_ref):
    """Per-sample inlier distance for one batch tile -> lane-dense (1, Bt)."""
    labels = labels_ref[...]                      # (1, Bt) i32, batch on lanes
    xt = xt_ref[...]                              # (F, Bt) f32
    num_class, num_feature = ct_ref.shape         # centers: (C, F) in SMEM
    block_b = labels.shape[1]

    # Per-class lane masks, built once and reused for both features.
    masks = [labels == c for c in range(num_class)]

    acc = jnp.zeros((1, block_b), jnp.float32)
    for f in range(num_feature):                  # static unroll, F = 2
        xf = xt[f:f + 1, :]                       # (1, Bt)
        # VPU select-chain gather of each sample's own center value: a scalar
        # SMEM read splatted across lanes -- no MXU push/drain, no (C, Bt)
        # one-hot intermediate.
        g = jnp.zeros_like(xf)
        for c in range(num_class):                # static unroll, C = 10
            g = jnp.where(masks[c], ct_ref[c, f], g)
        d = xf - g
        acc = acc + jnp.clip(d * d, _CLAMP_LO, _CLAMP_HI)

    # Reference clamps AFTER masking, so each of the C-1 masked-out classes
    # contributes the clamp floor 1e-12 per feature.
    inlier = acc * jnp.float32(1.0 / num_feature) + jnp.float32(
        (num_class - 1) * _CLAMP_LO)

    # Out-of-range labels (and the padded lanes, which carry label = -1):
    # every class is masked out in the reference, giving exactly C * 1e-12.
    valid = (labels >= 0) & (labels < num_class)
    inlier = jnp.where(valid, inlier, jnp.float32(num_class * _CLAMP_LO))
    return inlier


def _masked_partial_sum(inlier, *, true_batch):
    """Sum of this tile's inlier distances, excluding padded lanes."""
    block_b = inlier.shape[1]
    col = pl.program_id(0) * block_b + lax.broadcasted_iota(
        jnp.int32, (1, block_b), 1)
    in_batch = col < true_batch
    return jnp.sum(jnp.where(in_batch, inlier, jnp.float32(0.0)))


def center_loss_eval_kernel(labels_ref, xt_ref, ct_ref,
                            inlier_ref, psum_ref, *, true_batch):
    inlier = _inlier_tile(labels_ref, xt_ref, ct_ref)
    inlier_ref[...] = inlier
    partial_in = _masked_partial_sum(inlier, true_batch=true_batch)
    lane = lax.broadcasted_iota(jnp.int32, (_SUBLANE, _LANE), 1)
    # lane 0 of this tile's (8,128) block holds the partial inlier sum.
    psum_ref[...] = jnp.where(lane == 0, partial_in, jnp.float32(0.0))


def center_loss_train_kernel(labels_ref, xt_ref, ct_ref, pt_ref,
                             inlier_ref, psum_ref, *, true_batch, true_pseudo):
    inlier = _inlier_tile(labels_ref, xt_ref, ct_ref)
    inlier_ref[...] = inlier
    partial_in = _masked_partial_sum(inlier, true_batch=true_batch)
    lane = lax.broadcasted_iota(jnp.int32, (_SUBLANE, _LANE), 1)
    psum_ref[...] = jnp.where(lane == 0, partial_in, jnp.float32(0.0))

    # Outlier term: depends only on (centers, pseudo_x) -> compute ONCE on
    # grid step 0, not per batch tile (perf feedback).  Result (already the
    # mean over the true pseudo batch and features) lands in lane 1 of tile
    # 0's block, so each tile still writes only its own output block and the
    # batch axis stays safely "parallel".
    @pl.when(pl.program_id(0) == 0)
    def _():
        pt = pt_ref[...]                          # (F, Bp_pad) f32
        num_class, num_feature = ct_ref.shape
        bp_pad = pt.shape[1]
        pcol = lax.broadcasted_iota(jnp.int32, (1, bp_pad), 1)
        pmask = (pcol < true_pseudo).astype(jnp.float32)
        out_acc = jnp.zeros((1, bp_pad), jnp.float32)
        for f in range(num_feature):              # static, F = 2
            pf = pt[f:f + 1, :]
            for c in range(num_class):            # static, C = 10
                d = pf - ct_ref[c, f]
                out_acc = out_acc + jnp.clip(d * d, _CLAMP_LO, _CLAMP_HI)
        out_mean = jnp.sum(out_acc * pmask) * jnp.float32(
            1.0 / (true_pseudo * num_feature))
        psum_ref[...] = psum_ref[...] + jnp.where(lane == 1, out_mean,
                                                  jnp.float32(0.0))


@partial(jax.jit, static_argnames=("training", "block_b"))
def center_loss(x, labels, centers, pseudo_x=None, training=False, eta=1.0,
                block_b=512):
    """Returns (loss: scalar f32, inlier_dist: (B,) f32), matching the PyTorch module."""
    B, F = x.shape
    C = centers.shape[0]

    block_b = _round_up(block_b, _LANE)
    bt = min(block_b, _round_up(B, _LANE))        # lane-dense batch tile
    b_pad = _round_up(B, bt)
    num_tiles = b_pad // bt

    # Layout plumbing: batch on the lane axis, features on sublanes, padded to
    # a multiple of the tile.  With allow_input_fusion these producers may be
    # folded straight into the pallas_call operands (no standalone HBM trip).
    x_t = jnp.pad(x.astype(jnp.float32).T, ((0, 0), (0, b_pad - B)))
    labels_row = jnp.pad(labels.astype(jnp.int32).reshape(1, B),
                         ((0, 0), (0, b_pad - B)), constant_values=-1)
    centers32 = centers.astype(jnp.float32)       # (C, F) natural layout -> SMEM

    grid = (num_tiles,)
    labels_spec = pl.BlockSpec((1, bt), lambda i: (0, i))
    x_spec = pl.BlockSpec((F, bt), lambda i: (0, i))
    centers_spec = pl.BlockSpec(memory_space=pltpu.MemorySpace.SMEM)
    inlier_spec = pl.BlockSpec((1, bt), lambda i: (0, i))         # lane-dense
    psum_spec = pl.BlockSpec((_SUBLANE, _LANE), lambda i: (i, 0))  # per-tile block

    out_shape = (jax.ShapeDtypeStruct((1, b_pad), jnp.float32),
                 jax.ShapeDtypeStruct((num_tiles * _SUBLANE, _LANE), jnp.float32))
    out_specs = (inlier_spec, psum_spec)

    if training:
        assert pseudo_x is not None
        Bp = pseudo_x.shape[0]
        bp_pad = _round_up(Bp, _LANE)
        p_t = jnp.pad(pseudo_x.astype(jnp.float32).T, ((0, 0), (0, bp_pad - Bp)))
        pseudo_spec = pl.BlockSpec((F, bp_pad), lambda i: (0, 0))  # resident once

        kernel = partial(center_loss_train_kernel, true_batch=B, true_pseudo=Bp)
        inlier_pad, partials = pl.pallas_call(
            kernel,
            grid=grid,
            in_specs=[labels_spec, x_spec, centers_spec, pseudo_spec],
            out_specs=out_specs,
            out_shape=out_shape,
            compiler_params=pltpu.CompilerParams(
                dimension_semantics=("parallel",),
                allow_input_fusion=[True, True, False, True]),
        )(labels_row, x_t, centers32, p_t)
        inlier_mean = partials[::_SUBLANE, 0].sum() / B
        outlier_mean = partials[0, 1]
        loss = inlier_mean / eta * outlier_mean
    else:
        kernel = partial(center_loss_eval_kernel, true_batch=B)
        inlier_pad, partials = pl.pallas_call(
            kernel,
            grid=grid,
            in_specs=[labels_spec, x_spec, centers_spec],
            out_specs=out_specs,
            out_shape=out_shape,
            compiler_params=pltpu.CompilerParams(
                dimension_semantics=("parallel",),
                allow_input_fusion=[True, True, False]),
        )(labels_row, x_t, centers32)
        inlier_mean = partials[::_SUBLANE, 0].sum() / B
        loss = inlier_mean

    # Final cross-tile scalar reduction (<= num_tiles partials) and the eta
    # combine are finished here in the wrapper; the per-sample work is in the
    # kernel.
    return loss, inlier_pad[0, :B]


def center_loss_ref(x, labels, centers, pseudo_x=None, training=False, eta=1.0):
    """Pure-JAX reference mirroring the PyTorch forward exactly."""
    C = centers.shape[0]
    dist_mat = (x[:, None, :] - centers[None, :, :]) ** 2                   # (B, C, F)
    mask = (labels[:, None] == jnp.arange(C)[None, :]).astype(jnp.float32)  # (B, C)
    inl = jnp.clip(dist_mat * mask[:, :, None], 1e-12, 1e12).sum(axis=1)    # (B, F)
    inlier_dist = inl.mean(axis=1)                                          # (B,)
    if training:
        od = jnp.clip((pseudo_x[:, None, :] - centers[None, :, :]) ** 2,
                      1e-12, 1e12).sum(axis=1)
        loss = inlier_dist.mean() / eta * od.mean()
    else:
        loss = inlier_dist.mean()
    return loss, inlier_dist


if __name__ == "__main__":
    num_class, num_feature = 10, 2

    key = jax.random.PRNGKey(0)
    k_c, k_data = jax.random.split(key)
    centers = jax.random.normal(k_c, (num_class, num_feature), jnp.float32)

    # (batch, pseudo_batch, block_b): the second config forces multiple grid
    # tiles plus batch/pseudo padding to exercise masking and the parallel grid.
    for batch, pseudo_batch, block_b in [(8, 6, 512), (300, 70, 128)]:
        kx, kp, kl = jax.random.split(jax.random.fold_in(k_data, batch), 3)
        x = jax.random.normal(kx, (batch, num_feature), jnp.float32)
        pseudo_x = jax.random.normal(kp, (pseudo_batch, num_feature), jnp.float32)
        labels = jax.random.randint(kl, (batch,), 0, num_class, jnp.int32)

        # eval-mode forward (self.training == False branch)
        loss_e, inlier_e = center_loss(x, labels, centers, training=False,
                                       block_b=block_b)
        # training-mode forward (self.training == True branch)
        loss_t, inlier_t = center_loss(x, labels, centers, pseudo_x=pseudo_x,
                                       training=True, eta=1.0, block_b=block_b)
        jax.block_until_ready((loss_e, inlier_e, loss_t, inlier_t))

        rl_e, ri_e = center_loss_ref(x, labels, centers, training=False)
        rl_t, ri_t = center_loss_ref(x, labels, centers, pseudo_x=pseudo_x,
                                     training=True, eta=1.0)
        assert jnp.allclose(loss_e, rl_e, rtol=1e-4, atol=1e-6)
        assert jnp.allclose(inlier_e, ri_e, rtol=1e-4, atol=1e-6)
        assert jnp.allclose(loss_t, rl_t, rtol=1e-4, atol=1e-6)
        assert jnp.allclose(inlier_t, ri_t, rtol=1e-4, atol=1e-6)

    print("KERNEL_OK")
</pallas_src>

<mosaic_0001>
module attributes {stable_mosaic.version = 11 : i64} {
  func.func @center_loss_eval_kernel(%arg0: i32, %arg1: memref<1x128xi32, #tpu.memory_space<vmem>>, %arg2: memref<2x128xf32, #tpu.memory_space<vmem>>, %arg3: memref<10x2xf32, #tpu.memory_space<smem>>, %arg4: memref<1x128xf32, #tpu.memory_space<vmem>>, %arg5: memref<8x128xf32, #tpu.memory_space<vmem>>) attributes {dimension_semantics = [#tpu.dimension_semantics<parallel>], iteration_bounds = array<i64: 1>, scalar_prefetch = 0 : i64, scratch_operands = 0 : i64, tpu.core_type = #tpu.core_type<tc>, window_params = [{transform_indices = @transform_0, window_bounds = array<i64: 1, 128>}, {transform_indices = @transform_1, window_bounds = array<i64: 2, 128>}, {transform_indices = @transform_2, window_bounds = array<i64: 10, 2>}, {transform_indices = @transform_3, window_bounds = array<i64: 1, 128>}, {transform_indices = @transform_4, window_bounds = array<i64: 8, 128>}]} {
    %c0 = arith.constant 0 : index
    %c0_0 = arith.constant 0 : index
    %0 = vector.load %arg1[%c0, %c0_0] : memref<1x128xi32, #tpu.memory_space<vmem>>, vector<1x128xi32>
    %c0_1 = arith.constant 0 : index
    %c0_2 = arith.constant 0 : index
    %1 = vector.load %arg2[%c0_1, %c0_2] : memref<2x128xf32, #tpu.memory_space<vmem>>, vector<2x128xf32>
    %c0_i32 = arith.constant 0 : i32
    %2 = vector.broadcast %c0_i32 : i32 to vector<1x128xi32>
    %3 = arith.cmpi eq, %0, %2 : vector<1x128xi32>
    %c1_i32 = arith.constant 1 : i32
    %4 = vector.broadcast %c1_i32 : i32 to vector<1x128xi32>
    %5 = arith.cmpi eq, %0, %4 : vector<1x128xi32>
    %c2_i32 = arith.constant 2 : i32
    %6 = vector.broadcast %c2_i32 : i32 to vector<1x128xi32>
    %7 = arith.cmpi eq, %0, %6 : vector<1x128xi32>
    %c3_i32 = arith.constant 3 : i32
    %8 = vector.broadcast %c3_i32 : i32 to vector<1x128xi32>
    %9 = arith.cmpi eq, %0, %8 : vector<1x128xi32>
    %c4_i32 = arith.constant 4 : i32
    %10 = vector.broadcast %c4_i32 : i32 to vector<1x128xi32>
    %11 = arith.cmpi eq, %0, %10 : vector<1x128xi32>
    %c5_i32 = arith.constant 5 : i32
    %12 = vector.broadcast %c5_i32 : i32 to vector<1x128xi32>
    %13 = arith.cmpi eq, %0, %12 : vector<1x128xi32>
    %c6_i32 = arith.constant 6 : i32
    %14 = vector.broadcast %c6_i32 : i32 to vector<1x128xi32>
    %15 = arith.cmpi eq, %0, %14 : vector<1x128xi32>
    %c7_i32 = arith.constant 7 : i32
    %16 = vector.broadcast %c7_i32 : i32 to vector<1x128xi32>
    %17 = arith.cmpi eq, %0, %16 : vector<1x128xi32>
    %c8_i32 = arith.constant 8 : i32
    %18 = vector.broadcast %c8_i32 : i32 to vector<1x128xi32>
    %19 = arith.cmpi eq, %0, %18 : vector<1x128xi32>
    %c9_i32 = arith.constant 9 : i32
    %20 = vector.broadcast %c9_i32 : i32 to vector<1x128xi32>
    %21 = arith.cmpi eq, %0, %20 : vector<1x128xi32>
    %cst = arith.constant 0.000000e+00 : f32
    %22 = vector.broadcast %cst : f32 to vector<1x128xf32>
    %23 = vector.extract_strided_slice %1 {offsets = [0, 0], sizes = [1, 128], strides = [1, 1]} : vector<2x128xf32> to vector<1x128xf32>
    %cst_3 = arith.constant 0.000000e+00 : f32
    %24 = vector.broadcast %cst_3 : f32 to vector<1x128xf32>
    %c0_4 = arith.constant 0 : index
    %c0_5 = arith.constant 0 : index
    %25 = memref.load %arg3[%c0_4, %c0_5] : memref<10x2xf32, #tpu.memory_space<smem>>
    %26 = vector.broadcast %25 : f32 to vector<1x128xf32>
    %27 = arith.select %3, %26, %24 : vector<1x128xi1>, vector<1x128xf32>
    %c1 = arith.constant 1 : index
    %c0_6 = arith.constant 0 : index
    %28 = memref.load %arg3[%c1, %c0_6] : memref<10x2xf32, #tpu.memory_space<smem>>
    %29 = vector.broadcast %28 : f32 to vector<1x128xf32>
    %30 = arith.select %5, %29, %27 : vector<1x128xi1>, vector<1x128xf32>
    %c2 = arith.constant 2 : index
    %c0_7 = arith.constant 0 : index
    %31 = memref.load %arg3[%c2, %c0_7] : memref<10x2xf32, #tpu.memory_space<smem>>
    %32 = vector.broadcast %31 : f32 to vector<1x128xf32>
    %33 = arith.select %7, %32, %30 : vector<1x128xi1>, vector<1x128xf32>
    %c3 = arith.constant 3 : index
    %c0_8 = arith.constant 0 : index
    %34 = memref.load %arg3[%c3, %c0_8] : memref<10x2xf32, #tpu.memory_space<smem>>
    %35 = vector.broadcast %34 : f32 to vector<1x128xf32>
    %36 = arith.select %9, %35, %33 : vector<1x128xi1>, vector<1x128xf32>
    %c4 = arith.constant 4 : index
    %c0_9 = arith.constant 0 : index
    %37 = memref.load %arg3[%c4, %c0_9] : memref<10x2xf32, #tpu.memory_space<smem>>
    %38 = vector.broadcast %37 : f32 to vector<1x128xf32>
    %39 = arith.select %11, %38, %36 : vector<1x128xi1>, vector<1x128xf32>
    %c5 = arith.constant 5 : index
    %c0_10 = arith.constant 0 : index
    %40 = memref.load %arg3[%c5, %c0_10] : memref<10x2xf32, #tpu.memory_space<smem>>
    %41 = vector.broadcast %40 : f32 to vector<1x128xf32>
    %42 = arith.select %13, %41, %39 : vector<1x128xi1>, vector<1x128xf32>
    %c6 = arith.constant 6 : index
    %c0_11 = arith.constant 0 : index
    %43 = memref.load %arg3[%c6, %c0_11] : memref<10x2xf32, #tpu.memory_space<smem>>
    %44 = vector.broadcast %43 : f32 to vector<1x128xf32>
    %45 = arith.select %15, %44, %42 : vector<1x128xi1>, vector<1x128xf32>
    %c7 = arith.constant 7 : index
    %c0_12 = arith.constant 0 : index
    %46 = memref.load %arg3[%c7, %c0_12] : memref<10x2xf32, #tpu.memory_space<smem>>
    %47 = vector.broadcast %46 : f32 to vector<1x128xf32>
    %48 = arith.select %17, %47, %45 : vector<1x128xi1>, vector<1x128xf32>
    %c8 = arith.constant 8 : index
    %c0_13 = arith.constant 0 : index
    %49 = memref.load %arg3[%c8, %c0_13] : memref<10x2xf32, #tpu.memory_space<smem>>
    %50 = vector.broadcast %49 : f32 to vector<1x128xf32>
    %51 = arith.select %19, %50, %48 : vector<1x128xi1>, vector<1x128xf32>
    %c9 = arith.constant 9 : index
    %c0_14 = arith.constant 0 : index
    %52 = memref.load %arg3[%c9, %c0_14] : memref<10x2xf32, #tpu.memory_space<smem>>
    %53 = vector.broadcast %52 : f32 to vector<1x128xf32>
    %54 = arith.select %21, %53, %51 : vector<1x128xi1>, vector<1x128xf32>
    %55 = arith.subf %23, %54 : vector<1x128xf32>
    %56 = arith.mulf %55, %55 : vector<1x128xf32>
    %cst_15 = arith.constant 9.99999996E-13 : f32
    %cst_16 = arith.constant 9.99999995E+11 : f32
    %57 = vector.broadcast %cst_15 : f32 to vector<1x128xf32>
    %58 = arith.maximumf %57, %56 : vector<1x128xf32>
    %59 = vector.broadcast %cst_16 : f32 to vector<1x128xf32>
    %60 = arith.minimumf %59, %58 : vector<1x128xf32>
    %61 = arith.addf %22, %60 : vector<1x128xf32>
    %62 = vector.extract_strided_slice %1 {offsets = [1, 0], sizes = [1, 128], strides = [1, 1]} : vector<2x128xf32> to vector<1x128xf32>
    %cst_17 = arith.constant 0.000000e+00 : f32
    %63 = vector.broadcast %cst_17 : f32 to vector<1x128xf32>
    %c0_18 = arith.constant 0 : index
    %c1_19 = arith.constant 1 : index
    %64 = memref.load %arg3[%c0_18, %c1_19] : memref<10x2xf32, #tpu.memory_space<smem>>
    %65 = vector.broadcast %64 : f32 to vector<1x128xf32>
    %66 = arith.select %3, %65, %63 : vector<1x128xi1>, vector<1x128xf32>
    %c1_20 = arith.constant 1 : index
    %c1_21 = arith.constant 1 : index
    %67 = memref.load %arg3[%c1_20, %c1_21] : memref<10x2xf32, #tpu.memory_space<smem>>
    %68 = vector.broadcast %67 : f32 to vector<1x128xf32>
    %69 = arith.select %5, %68, %66 : vector<1x128xi1>, vector<1x128xf32>
    %c2_22 = arith.constant 2 : index
    %c1_23 = arith.constant 1 : index
    %70 = memref.load %arg3[%c2_22, %c1_23] : memref<10x2xf32, #tpu.memory_space<smem>>
    %71 = vector.broadcast %70 : f32 to vector<1x128xf32>
    %72 = arith.select %7, %71, %69 : vector<1x128xi1>, vector<1x128xf32>
    %c3_24 = arith.constant 3 : index
    %c1_25 = arith.constant 1 : index
    %73 = memref.load %arg3[%c3_24, %c1_25] : memref<10x2xf32, #tpu.memory_space<smem>>
    %74 = vector.broadcast %73 : f32 to vector<1x128xf32>
    %75 = arith.select %9, %74, %72 : vector<1x128xi1>, vector<1x128xf32>
    %c4_26 = arith.constant 4 : index
    %c1_27 = arith.constant 1 : index
    %76 = memref.load %arg3[%c4_26, %c1_27] : memref<10x2xf32, #tpu.memory_space<smem>>
    %77 = vector.broadcast %76 : f32 to vector<1x128xf32>
    %78 = arith.select %11, %77, %75 : vector<1x128xi1>, vector<1x128xf32>
    %c5_28 = arith.constant 5 : index
    %c1_29 = arith.constant 1 : index
    %79 = memref.load %arg3[%c5_28, %c1_29] : memref<10x2xf32, #tpu.memory_space<smem>>
    %80 = vector.broadcast %79 : f32 to vector<1x128xf32>
    %81 = arith.select %13, %80, %78 : vector<1x128xi1>, vector<1x128xf32>
    %c6_30 = arith.constant 6 : index
    %c1_31 = arith.constant 1 : index
    %82 = memref.load %arg3[%c6_30, %c1_31] : memref<10x2xf32, #tpu.memory_space<smem>>
    %83 = vector.broadcast %82 : f32 to vector<1x128xf32>
    %84 = arith.select %15, %83, %81 : vector<1x128xi1>, vector<1x128xf32>
    %c7_32 = arith.constant 7 : index
    %c1_33 = arith.constant 1 : index
    %85 = memref.load %arg3[%c7_32, %c1_33] : memref<10x2xf32, #tpu.memory_space<smem>>
    %86 = vector.broadcast %85 : f32 to vector<1x128xf32>
    %87 = arith.select %17, %86, %84 : vector<1x128xi1>, vector<1x128xf32>
    %c8_34 = arith.constant 8 : index
    %c1_35 = arith.constant 1 : index
    %88 = memref.load %arg3[%c8_34, %c1_35] : memref<10x2xf32, #tpu.memory_space<smem>>
    %89 = vector.broadcast %88 : f32 to vector<1x128xf32>
    %90 = arith.select %19, %89, %87 : vector<1x128xi1>, vector<1x128xf32>
    %c9_36 = arith.constant 9 : index
    %c1_37 = arith.constant 1 : index
    %91 = memref.load %arg3[%c9_36, %c1_37] : memref<10x2xf32, #tpu.memory_space<smem>>
    %92 = vector.broadcast %91 : f32 to vector<1x128xf32>
    %93 = arith.select %21, %92, %90 : vector<1x128xi1>, vector<1x128xf32>
    %94 = arith.subf %62, %93 : vector<1x128xf32>
    %95 = arith.mulf %94, %94 : vector<1x128xf32>
    %cst_38 = arith.constant 9.99999996E-13 : f32
    %cst_39 = arith.constant 9.99999995E+11 : f32
    %96 = vector.broadcast %cst_38 : f32 to vector<1x128xf32>
    %97 = arith.maximumf %96, %95 : vector<1x128xf32>
    %98 = vector.broadcast %cst_39 : f32 to vector<1x128xf32>
    %99 = arith.minimumf %98, %97 : vector<1x128xf32>
    %100 = arith.addf %61, %99 : vector<1x128xf32>
    %cst_40 = arith.constant 5.000000e-01 : f32
    %101 = vector.broadcast %cst_40 : f32 to vector<1x128xf32>
    %102 = arith.mulf %100, %101 : vector<1x128xf32>
    %cst_41 = arith.constant 9.000000e-12 : f32
    %103 = vector.broadcast %cst_41 : f32 to vector<1x128xf32>
    %104 = arith.addf %102, %103 : vector<1x128xf32>
    %c0_i32_42 = arith.constant 0 : i32
    %105 = vector.broadcast %c0_i32_42 : i32 to vector<1x128xi32>
    %106 = arith.cmpi sge, %0, %105 : vector<1x128xi32>
    %c10_i32 = arith.constant 10 : i32
    %107 = vector.broadcast %c10_i32 : i32 to vector<1x128xi32>
    %108 = arith.cmpi slt, %0, %107 : vector<1x128xi32>
    %109 = arith.andi %106, %108 : vector<1x128xi1>
    %cst_43 = arith.constant 9.99999996E-12 : f32
    %110 = vector.broadcast %cst_43 : f32 to vector<1x128xf32>
    %111 = arith.select %109, %104, %110 : vector<1x128xi1>, vector<1x128xf32>
    %c0_44 = arith.constant 0 : index
    %c0_45 = arith.constant 0 : index
    %112 = vector.load %arg4[%c0_44, %c0_45] : memref<1x128xf32, #tpu.memory_space<vmem>>, vector<1x128xf32>
    tpu.vector_store %arg4[%c0_44, %c0_45], %111 {strides = array<i32>} : memref<1x128xf32, #tpu.memory_space<vmem>>, vector<1x128xf32>,
    %c128_i32 = arith.constant 128 : i32
    %113 = arith.muli %arg0, %c128_i32 : i32
    %114 = tpu.iota {dimensions = array<i32: 1>} : vector<1x128xi32>
    %115 = vector.broadcast %113 : i32 to vector<1x128xi32>
    %116 = arith.addi %115, %114 : vector<1x128xi32>
    %c8_i32_46 = arith.constant 8 : i32
    %117 = vector.broadcast %c8_i32_46 : i32 to vector<1x128xi32>
    %118 = arith.cmpi slt, %116, %117 : vector<1x128xi32>
    %cst_47 = arith.constant 0.000000e+00 : f32
    %119 = vector.broadcast %cst_47 : f32 to vector<1x128xf32>
    %120 = arith.select %118, %111, %119 : vector<1x128xi1>, vector<1x128xf32>
    %121 = vector.shape_cast %120 : vector<1x128xf32> to vector<1x1x128xf32>
    %cst_48 = arith.constant dense<0.000000e+00> : vector<1xf32>
    %122 = vector.multi_reduction <add>, %121, %cst_48 [1, 2] : vector<1x1x128xf32> to vector<1xf32>
    %123 = vector.shape_cast %122 : vector<1xf32> to vector<1x1x1xf32>
    %124 = vector.extract %123[0, 0, 0] : f32 from vector<1x1x1xf32>
    %125 = tpu.iota {dimensions = array<i32: 1>} : vector<8x128xi32>
    %c0_i32_49 = arith.constant 0 : i32
    %126 = vector.broadcast %c0_i32_49 : i32 to vector<8x128xi32>
    %127 = arith.cmpi eq, %125, %126 : vector<8x128xi32>
    %cst_50 = arith.constant 0.000000e+00 : f32
    %128 = vector.broadcast %124 : f32 to vector<8x128xf32>
    %129 = vector.broadcast %cst_50 : f32 to vector<8x128xf32>
    %130 = arith.select %127, %128, %129 : vector<8x128xi1>, vector<8x128xf32>
    %c0_51 = arith.constant 0 : index
    %c0_52 = arith.constant 0 : index
    %131 = vector.load %arg5[%c0_51, %c0_52] : memref<8x128xf32, #tpu.memory_space<vmem>>, vector<8x128xf32>
    tpu.vector_store %arg5[%c0_51, %c0_52], %130 {strides = array<i32>} : memref<8x128xf32, #tpu.memory_space<vmem>>, vector<8x128xf32>,
    return
  }
  func.func @transform_0(%arg0: i32) -> (i32, i32) {
    %c0_i32 = arith.constant 0 : i32
    %c0_i32_0 = arith.constant 0 : i32
    return %c0_i32, %arg0 : i32, i32
  }
  func.func @transform_1(%arg0: i32) -> (i32, i32) {
    %c0_i32 = arith.constant 0 : i32
    %c0_i32_0 = arith.constant 0 : i32
    return %c0_i32, %arg0 : i32, i32
  }
  func.func @transform_2(%arg0: i32) -> (i32, i32) {
    %c0_i32 = arith.constant 0 : i32
    %c0_i32_0 = arith.constant 0 : i32
    %c0_i32_1 = arith.constant 0 : i32
    return %c0_i32, %c0_i32_0 : i32, i32
  }
  func.func @transform_3(%arg0: i32) -> (i32, i32) {
    %c0_i32 = arith.constant 0 : i32
    %c0_i32_0 = arith.constant 0 : i32
    return %c0_i32, %arg0 : i32, i32
  }
  func.func @transform_4(%arg0: i32) -> (i32, i32) {
    %c0_i32 = arith.constant 0 : i32
    %c0_i32_0 = arith.constant 0 : i32
    return %arg0, %c0_i32 : i32, i32
  }
}

</mosaic_0001>

<bundles_post_ra>
// kernel: center_loss.2
= control target key start
LH: loop header
LB: loop body
LE: loop exit
PB: predicated region body
PF: predicated region fallthrough
CT: control target
= control target key end

     0   :  { %s407_s0 = inlined_call_operand.vmem [shape: f32[10,2], index: 0, kind: input, shape index: {}]   ;;  %s408_s1 = inlined_call_operand.vmem [shape: f32[2,8], index: 1, kind: input, shape index: {}]   ;;  %s409_s2 = inlined_call_operand.<no memory space> [shape: f32[], index: 2, kind: input, shape index: {}]   ;;  %s410_s3 = inlined_call_operand.vmem [shape: s32[1,8], index: 3, kind: input, shape index: {}]   ;;  %s411_s4 = inlined_call_operand.<no memory space> [shape: s32[], index: 4, kind: input, shape index: {}]   ;;  %s412_s5 = inlined_call_operand.vmem [shape: f32[1,128], index: 5, kind: output, shape index: {0}]   ;;  %s413_s6 = inlined_call_operand.vmem [shape: f32[8,128], index: 6, kind: output, shape index: {1}]  }
   0x1   :  { %v12_v0 = vstv %s411_s4  ;;  %v13_v1 = vstv %s409_s2 }
   0x2   :  { %14 = vsyncpa [#allocation13], 0  ;;  %s24_s27 = sshll.u32 %s407_s0, 4  ;;  %s25_s27 = int_to_ptr.vmem [resolvable:$true] %s24_s27 }
   0x3   :  { %s216_s28 = scalar_lea.vmem %s25_s27, 256  ;;  %p221_p1 = scmp.lt.s32.totalorder %s25_s27, %s25_s27 }
   0x4   :  { %p217_p0 = scmp.ne.s32.totalorder %s25_s27, %s216_s28  ;;  %p222_p2 = scmp.lt.s32.totalorder %s216_s28, %s216_s28 }
   0x6   :  { %p223_p3 = por %p222_p2, %p221_p1 }
   0x8   :  { %p224_p4 = pnand %p223_p3, %p217_p0 }
   0xa   :  { %227 = shalt.err (!%p224_p4)
}
   0xb   :  { %s230_s29 = smov [#allocation12]   ;;  %s231_s30 = smov 128  }
   0xc   :  { %s232_s4 = smov 8  }
   0xd   :  { %30 = dma.vmem_to_smem %s25_s27, 256, %s230_s29, [#allocation13], %s231_s30, %s231_s30, %s232_s4  }
   0xe   :  { %228 = dma.done.wait [#allocation13], 256  }
   0xf   :  { %229 = vsyncadd [#allocation13], 4294967040 }
  0x10   :  { %34 = sfence }
  0x11   :  { %v36_v2 = vlaneseq  ;;  %s277_s2 = sld [smem:[#allocation12]]  ;;  %v35_v3 = vld [vmem:[%s410_s3] sm:$0x1] }
  0x12   :  { %s282_s8 = sld [smem:[#allocation12 + $0x80]]  ;;  %v49_v6 = vld [vmem:[%s408_s1] sm:$0x3] }
  0x13   :  { %v284_v4 = vshrl.u32 %v36_v2, 7  ;;  %v286_v5 = vand.u32 127, %v36_v2  ;;  %s291_s11 = sld [smem:[#allocation12 + $0x100]] }
  0x14   :  { %s293_s12 = sld [smem:[#allocation12 + $0x180]] }
  0x15   :  { %vm39_vm0 = vcmp.lt.s32.totalorder %v284_v4, 1  ;;  %vm44_vm1 = vcmp.lt.s32.totalorder %v286_v5, 8  ;;  %vm53_vm2 = vcmp.lt.s32.totalorder %v284_v4, 2  ;;  %s298_s3 = sld [smem:[#allocation12 + $0x200]]  ;;  %v143_v14 = vsub.s32 0, %v284_v4 }
  0x16   :  { %v40_v7 = vsel %vm39_vm0, %v35_v3, %v12_v0  ;;  %v54_v8 = vsel %vm53_vm2, %v49_v6, %v13_v1  ;;  %s300_s13 = sld [smem:[#allocation12 + $0x280]]  ;;  %vm168_vm0 = vcmask 1040384   ;;  %vm179_vm2 = vcmp.eq.s32.totalorder %v286_v5, 0 }
  0x17   :  { %v45_v9 = vsel %vm44_vm1, %v40_v7, %v12_v0  ;;  %v59_v10 = vsel %vm44_vm1, %v54_v8, %v13_v1  ;;  %s306_s1 = sld [smem:[#allocation12 + $0x300]]  ;;  %v76_v12 = vstv %s277_s2 }
  0x18   :  { %48 = vst [vmem:[#allocation14] sm:$0x1] %v45_v9  ;;  %62 = vst [vmem:[#allocation15] sm:$0x3] %v59_v10  ;;  %s308_s14 = sld [smem:[#allocation12 + $0x380]]  ;;  %v79_v13 = vstv %s282_s8 }
  0x19   :  { %s310_s15 = sld [smem:[#allocation12 + $0x400]]  ;;  %v82_v15 = vstv %s291_s11 }
  0x1a   :  { %s312_s16 = sld [smem:[#allocation12 + $0x480]]  ;;  %v85_v16 = vstv %s293_s12 }
  0x1b   :  { %s314_s17 = sld [smem:[#allocation12 + $0x1]]  ;;  %v88_v17 = vstv %s298_s3 }
  0x1c   :  { %s316_s18 = sld [smem:[#allocation12 + $0x81]]  ;;  %v91_v18 = vstv %s300_s13 }
  0x1d   :  { %s318_s19 = sld [smem:[#allocation12 + $0x101]]  ;;  %v94_v19 = vstv %s306_s1 }
  0x1e   :  { %s320_s20 = sld [smem:[#allocation12 + $0x181]]  ;;  %v97_v20 = vstv %s308_s14 }
  0x1f   :  { %v322_v11 = vld [vmem:[#allocation14] sm:$0x1]  ;;  %s326_s21 = sld [smem:[#allocation12 + $0x201]]  ;;  %v100_v21 = vstv %s310_s15  ;;  %v64_v49 = vld [vmem:[#allocation15] sm:$0x3] }
  0x20   :  { %s333_s22 = sld [smem:[#allocation12 + $0x281]]  ;;  %vm65_vm3 = vcmp.eq.s32.totalorder %v322_v11, 0  ;;  %vm66_vm4 = vcmp.eq.s32.totalorder %v322_v11, 1  ;;  %vm67_vm5 = vcmp.eq.s32.totalorder %v322_v11, 2  ;;  %vm68_vm6 = vcmp.eq.s32.totalorder %v322_v11, 3 }
  0x21   :  { %s339_s23 = sld [smem:[#allocation12 + $0x301]]  ;;  %v77_v22 = vsel %vm65_vm3, %v76_v12, 0.0  ;;  %v111_v24 = vstv %s314_s17  ;;  %vm69_vm7 = vcmp.eq.s32.totalorder %v322_v11, 4  ;;  %vm70_vm8 = vcmp.eq.s32.totalorder %v322_v11, 5 }
  0x22   :  { %s346_s24 = sld [smem:[#allocation12 + $0x381]]  ;;  %v80_v23 = vsel %vm66_vm4, %v79_v13, %v77_v22  ;;  %v114_v25 = vstv %s316_s18  ;;  %v112_v28 = vsel %vm65_vm3, %v111_v24, 0.0  ;;  %vm71_vm9 = vcmp.eq.s32.totalorder %v322_v11, 6 }
  0x23   :  { %v117_v26 = vstv %s318_s19  ;;  %s353_s25 = sld [smem:[#allocation12 + $0x401]]  ;;  %v83_v27 = vsel %vm67_vm5, %v82_v15, %v80_v23  ;;  %v115_v31 = vsel %vm66_vm4, %v114_v25, %v112_v28  ;;  %vm72_vm10 = vcmp.eq.s32.totalorder %v322_v11, 7 }
  0x24   :  { %v120_v29 = vstv %s320_s20  ;;  %s210_s26 = sld [smem:[#allocation12 + $0x481]]  ;;  %v86_v30 = vsel %vm68_vm6, %v85_v16, %v83_v27  ;;  %v118_v34 = vsel %vm67_vm5, %v117_v26, %v115_v31  ;;  %v103_v40 = vstv %s312_s16 }
  0x25   :  { %v123_v32 = vstv %s326_s21  ;;  %v89_v33 = vsel %vm69_vm7, %v88_v17, %v86_v30  ;;  %v121_v37 = vsel %vm68_vm6, %v120_v29, %v118_v34  ;;  %vm73_vm11 = vcmp.eq.s32.totalorder %v322_v11, 8 }
  0x26   :  { %v126_v35 = vstv %s333_s22  ;;  %v92_v36 = vsel %vm70_vm8, %v91_v18, %v89_v33  ;;  %v124_v41 = vsel %vm69_vm7, %v123_v32, %v121_v37  ;;  %vm74_vm12 = vcmp.eq.s32.totalorder %v322_v11, 9 }
  0x27   :  { %v129_v38 = vstv %s339_s23  ;;  %v95_v39 = vsel %vm71_vm9, %v94_v19, %v92_v36  ;;  %v127_v44 = vsel %vm70_vm8, %v126_v35, %v124_v41  ;;  %vm156_vm13 = vcmp.ge.s32.totalorder %v322_v11, 0 }
  0x28   :  { %v132_v42 = vstv %s346_s24  ;;  %v98_v43 = vsel %vm72_vm10, %v97_v20, %v95_v39  ;;  %v130_v47 = vsel %vm71_vm9, %v129_v38, %v127_v44  ;;  %vm157_vm14 = vcmp.lt.s32.totalorder %v322_v11, 10 }
  0x29   :  { %v135_v45 = vstv %s353_s25  ;;  %v101_v46 = vsel %vm73_vm11, %v100_v21, %v98_v43  ;;  %v133_v51 = vsel %vm72_vm10, %v132_v42, %v130_v47  ;;  %vm158_vm15 = vmand %vm156_vm13, %vm157_vm14 }
  0x2a   :  { %v138_v48 = vstv %s210_s26  ;;  %v104_v50 = vsel %vm74_vm12, %v103_v40, %v101_v46  ;;  %v136_v53 = vsel %vm73_vm11, %v135_v45, %v133_v51 }
  0x2b   :  { %v105_v52 = vsub.f32 %v64_v49, %v104_v50  ;;  %v139_v54 = vsel %vm74_vm12, %v138_v48, %v136_v53 }
  0x2c   :  { %v144_v56 = vrot.slane %v139_v54, %v143_v14 }
  0x2d   :  { %v106_v55 = vmul.f32 %v105_v52, %v105_v52 }
  0x2e   :  { %v146_v57 = vsub.f32 %v64_v49, %v144_v56 }
  0x2f   :  { %v107_v58 = vmax.f32 %v106_v55, 1e-12 }
  0x30   :  { %v147_v59 = vmul.f32 %v146_v57, %v146_v57 }
  0x31   :  { %v108_v61 = vmin.f32 %v107_v58, 1e+12 }
  0x32   :  { %v148_v60 = vmax.f32 %v147_v59, 1e-12 }
  0x34   :  { %v149_v62 = vmin.f32 %v148_v60, 1e+12 }
  0x36   :  { %v151_v63 = vrot.slane %v149_v62, 1 }
  0x38   :  { %v153_v0 = vadd.f32 %v151_v63, %v108_v61 }
  0x3a   :  { %v154_v1 = vmul.f32 0.5, %v153_v0 }
  0x3c   :  { %v155_v2 = vadd.f32 9e-12, %v154_v1 }
  0x3e   :  { %v159_v3 = vsel %vm158_vm15, %v155_v2, 1e-11 }
  0x3f   :  { %160 = vst [vmem:[%s412_s5] sm:$0x1] %v159_v3  ;;  %v167_v4 = vsel %vm44_vm1, %v159_v3, 0.0 }
  0x40   :  { %v169_v6 = vsel %vm168_vm0, %v167_v4, 0.0 }
  0x41   :  { %170 = vadd.xlane.f32.xlu0 %v169_v6 }
  0xca   :  { %v171_v7 = vpop.xlane.xlu0 %170 }
  0xcb   :  { %v172_v8 = vrot.slane %v171_v7, 4 }
  0xcd   :  { %v173_v9 = vadd.f32 %v172_v8, %v171_v7 }
  0xcf   :  { %v174_v10 = vrot.slane %v173_v9, 2 }
  0xd1   :  { %v175_v12 = vadd.f32 %v174_v10, %v173_v9 }
  0xd3   :  { %v176_v11 = vrot.slane %v175_v12, 1 }
  0xd5   :  { %v177_v13 = vadd.f32 %v176_v11, %v175_v12 }
  0xd7   :  { %211 = vpush %v177_v13 }
 0x108   :  { %s212_s29 = spop %211 }
 0x109   :  { %v180_v14 = vstv %s212_s29 }
 0x10a   :  { %v181_v15 = vsel %vm179_vm2, %v180_v14, 0.0 }
 0x10b   :  { %182 = vst [vmem:[%s413_s6] sm:$0xff] %v181_v15 }
 0x10c   :  { %191 = vsyncpa [#allocation13], 1 }

</bundles_post_ra>
